<compile_context>
chip_gen: v5e
topology: v5e:2x2
jax: 0.10.0
libtpu: 0.0.40
codegen_flags: <defaults>
</compile_context>

<pallas_src>
import math

import jax
import jax.numpy as jnp
from jax.experimental import pallas as pl
from jax.experimental.pallas import tpu as pltpu


def _round_up(x: int, m: int) -> int:
    return ((x + m - 1) // m) * m


def _cdiv(a: int, b: int) -> int:
    return -(-a // b)


def _vmem_physical_bytes() -> int:
    """Per-core physical VMEM; falls back to the most conservative value (v7x)."""
    try:
        cap = getattr(pltpu.get_tpu_info(), "vmem_capacity_bytes", None)
        if cap:
            return int(cap)
    except Exception:
        pass
    return 64 << 20


# ----------------------------------------------------------------------------
# Kernels
# ----------------------------------------------------------------------------

def _ffn_kernel_resident(x_ref, w1_ref, t1_ref, w2_ref, t2_ref, o_ref):
    """Whole FFN for one M tile; W1/W2 have constant index_maps -> stay resident."""
    x = x_ref[...]
    h = jnp.dot(x.astype(w1_ref.dtype), w1_ref[...],
                preferred_element_type=jnp.float32)
    h = jnp.maximum(h + t1_ref[...], 0.0)
    y = jnp.dot(h.astype(w2_ref.dtype), w2_ref[...],
                preferred_element_type=jnp.float32)
    o_ref[...] = (y + t2_ref[...] + x.astype(jnp.float32)).astype(o_ref.dtype)


def _ffn_kernel_tiled(x_ref, w1_ref, t1_ref, w2_ref, t2_ref, o_ref, acc_ref):
    """Hidden axis tiled (fc2 reduction axis) -> f32 accumulator in VMEM."""
    j = pl.program_id(1)

    @pl.when(j == 0)
    def _init():
        acc_ref[...] = jnp.zeros_like(acc_ref)

    x = x_ref[...]
    h = jnp.dot(x.astype(w1_ref.dtype), w1_ref[...],
                preferred_element_type=jnp.float32)
    h = jnp.maximum(h + t1_ref[...], 0.0)
    acc_ref[...] += jnp.dot(h.astype(w2_ref.dtype), w2_ref[...],
                            preferred_element_type=jnp.float32)

    @pl.when(j == pl.num_programs(1) - 1)
    def _finalize():
        o_ref[...] = (acc_ref[...] + t2_ref[...]
                      + x.astype(jnp.float32)).astype(o_ref.dtype)


# ----------------------------------------------------------------------------
# One-time weight preparation (hoisted out of the per-call path)
# ----------------------------------------------------------------------------

def _resident_fits(H: int, C: int, w_itemsize: int, budget: int) -> bool:
    weight_bytes = 2 * 2 * H * C * w_itemsize        # W1 + W2, x2 pipeline buffers
    bias_bytes = 2 * 2 * (H + C) * 4
    act_reserve = 4 * 512 * C * 4 + 512 * H * 4      # x/out tiles (tm<=512) + f32 h
    return weight_bytes + bias_bytes + act_reserve + (4 << 20) <= budget


def prepare_ffn_params(params, *, eps=1e-5, compute_dtype=jnp.bfloat16,
                       mode="auto", th=512):
    """Fold BN into the conv weights, transpose to (K, N) layout, pick the layout.

    Run once at model init; ffn_forward only ever touches the activation.
    """
    # TODO(synk): training-mode BatchNorm (batch statistics) and stochastic
    # DropPath are not implemented; this is the eval-mode forward pass only.
    w1, b1 = params["w1"], params["b1"]
    g1, be1, m1, v1 = params["gamma1"], params["beta1"], params["mean1"], params["var1"]
    w2, b2 = params["w2"], params["b2"]
    g2, be2, m2, v2 = params["gamma2"], params["beta2"], params["mean2"], params["var2"]

    if w1.ndim == 4:  # PyTorch Conv2d 1x1 weight layout (H, C, 1, 1)
        w1 = w1.reshape(w1.shape[0], w1.shape[1])
    if w2.ndim == 4:
        w2 = w2.reshape(w2.shape[0], w2.shape[1])

    H, C = w1.shape
    assert w2.shape == (C, H), "residual requires out_features == in_features"

    f32 = jnp.float32
    s1 = g1.astype(f32) / jnp.sqrt(v1.astype(f32) + eps)
    t1 = be1.astype(f32) + s1 * (b1.astype(f32) - m1.astype(f32))
    s2 = g2.astype(f32) / jnp.sqrt(v2.astype(f32) + eps)
    t2 = be2.astype(f32) + s2 * (b2.astype(f32) - m2.astype(f32))

    # Fold the BN scale into the weight rows (in f32), then pre-transpose so both
    # in-kernel dots are plain (M,K)@(K,N) -> straight K-major MXU feed.
    w1t = (w1.astype(f32) * s1[:, None]).T.astype(compute_dtype)   # (C, H)
    w2t = (w2.astype(f32) * s2[:, None]).T.astype(compute_dtype)   # (H, C)
    t1 = t1.reshape(1, H)
    t2 = t2.reshape(1, C)

    if mode == "auto":
        budget = int(_vmem_physical_bytes() * 0.75)
        mode = ("resident"
                if _resident_fits(H, C, jnp.dtype(compute_dtype).itemsize, budget)
                else "tiled")

    if mode == "tiled":
        # Hidden tile: lane multiple of 128 (ideally 256 on v6e/v7x -- default 512
        # satisfies both); zero-pad the hidden dim once here, never per call.
        th = max(128, _round_up(min(th, _round_up(H, 128)), 128))
        H_pad = _round_up(H, th)
        if H_pad != H:
            w1t = jnp.pad(w1t, ((0, 0), (0, H_pad - H)))
            w2t = jnp.pad(w2t, ((0, H_pad - H), (0, 0)))
            t1 = jnp.pad(t1, ((0, 0), (0, H_pad - H)))
    else:
        th = None
        H_pad = H

    return dict(mode=mode, w1t=w1t, t1=t1, w2t=w2t, t2=t2,
                C=C, H=H, H_pad=H_pad, th=th, compute_dtype=compute_dtype)


# ----------------------------------------------------------------------------
# Per-call forward
# ----------------------------------------------------------------------------

def ffn_forward(x, prepped, *, tm=None):
    """Fused eval-mode FFN: BN2(Conv1x1(relu(BN1(Conv1x1(x))))) + x."""
    mode = prepped["mode"]
    C, H_pad, th = prepped["C"], prepped["H_pad"], prepped["th"]
    w1t, t1, w2t, t2 = prepped["w1t"], prepped["t1"], prepped["w2t"], prepped["t2"]
    cdt = prepped["compute_dtype"]

    *lead, Cx = x.shape
    assert Cx == C
    M = int(math.prod(lead)) if lead else 1
    x2d = x.reshape(M, C)
    out_dtype = x.dtype
    x_item = jnp.dtype(out_dtype).itemsize
    w_item = jnp.dtype(cdt).itemsize

    # M tile: sublane multiple of 8 (or the full M for small batches).  On v7x,
    # an even m_tiles lets the "parallel" axis split evenly over the 2 TCs.
    if tm is None:
        tm = 512 if mode == "resident" else 768
    if M <= tm:
        tm = M                      # block dim == full array dim is always legal
    else:
        tm = max(8, (tm // 8) * 8)
    m_tiles = _cdiv(M, tm)
    M_pad = m_tiles * tm
    # Pad activation rows only when strictly necessary (ragged M edge).
    if M_pad != M:
        x2d = jnp.pad(x2d, ((0, M_pad - M), (0, 0)))

    phys = _vmem_physical_bytes()

    if mode == "resident":
        grid = (m_tiles,)
        in_specs = [
            pl.BlockSpec((tm, C), lambda i: (i, 0)),        # x tile
            pl.BlockSpec((C, H_pad), lambda i: (0, 0)),     # W1' resident
            pl.BlockSpec((1, H_pad), lambda i: (0, 0)),     # bias1
            pl.BlockSpec((H_pad, C), lambda i: (0, 0)),     # W2' resident
            pl.BlockSpec((1, C), lambda i: (0, 0)),         # bias2
        ]
        out_specs = pl.BlockSpec((tm, C), lambda i: (i, 0))
        scratch = []
        kernel = _ffn_kernel_resident
        dim_sem = ("parallel",)
        weight_stream_bytes = 2 * H_pad * C * w_item        # DMA'd once
        footprint = (2 * 2 * H_pad * C * w_item             # W1/W2 (x2 buffers)
                     + 2 * 2 * (H_pad + C) * 4              # biases
                     + 2 * tm * C * 2 * x_item              # x/out double buffers
                     + tm * H_pad * 4 + 2 * tm * C * 4)     # f32 intermediates
    else:
        h_tiles = H_pad // th
        grid = (m_tiles, h_tiles)
        in_specs = [
            pl.BlockSpec((tm, C), lambda i, j: (i, 0)),     # x tile
            pl.BlockSpec((C, th), lambda i, j: (0, j)),     # W1' hidden strip
            pl.BlockSpec((1, th), lambda i, j: (0, j)),     # bias1 strip
            pl.BlockSpec((th, C), lambda i, j: (j, 0)),     # W2' hidden strip
            pl.BlockSpec((1, C), lambda i, j: (0, 0)),      # bias2
        ]
        out_specs = pl.BlockSpec((tm, C), lambda i, j: (i, 0))
        scratch = [pltpu.VMEM((tm, C), jnp.float32)]
        kernel = _ffn_kernel_tiled
        dim_sem = ("parallel", "arbitrary")
        weight_stream_bytes = 2 * H_pad * C * w_item * m_tiles
        footprint = (2 * 2 * th * C * w_item
                     + 2 * 2 * (th + C) * 4
                     + 2 * tm * C * 2 * x_item
                     + tm * C * 4                            # acc scratch
                     + tm * th * 4 + tm * C * 4)

    vmem_limit = min(int(phys * 0.9), max(32 << 20, int(footprint * 1.5)))

    cost = pl.CostEstimate(
        flops=4 * M_pad * H_pad * C,                         # two matmuls
        transcendentals=0,
        bytes_accessed=(2 * M_pad * C * x_item               # x in, out
                        + weight_stream_bytes
                        + (H_pad + C) * 4),                  # biases
    )

    out = pl.pallas_call(
        kernel,
        out_shape=jax.ShapeDtypeStruct((M_pad, C), out_dtype),
        grid_spec=pltpu.PrefetchScalarGridSpec(
            num_scalar_prefetch=0,
            grid=grid,
            in_specs=in_specs,
            out_specs=out_specs,
            scratch_shapes=scratch,
        ),
        compiler_params=pltpu.CompilerParams(
            dimension_semantics=dim_sem,
            vmem_limit_bytes=vmem_limit,
        ),
        cost_estimate=cost,
    )(x2d, w1t, t1, w2t, t2)

    if M_pad != M:
        out = out[:M]
    return out.reshape(*lead, C)


# ----------------------------------------------------------------------------
# Pure-JAX reference (eval-mode forward)
# ----------------------------------------------------------------------------

def ffn_reference(x, params, *, eps=1e-5):
    w1 = params["w1"].reshape(params["w1"].shape[0], -1)
    w2 = params["w2"].reshape(params["w2"].shape[0], -1)
    s1 = params["gamma1"] / jnp.sqrt(params["var1"] + eps)
    t1 = params["beta1"] + s1 * (params["b1"] - params["mean1"])
    s2 = params["gamma2"] / jnp.sqrt(params["var2"] + eps)
    t2 = params["beta2"] + s2 * (params["b2"] - params["mean2"])
    h = jnp.maximum(x @ w1.T * s1 + t1, 0.0)
    y = h @ w2.T * s2 + t2
    return y + x


if __name__ == "__main__":
    in_features = 64
    hidden_features = 200   # not 128-aligned: exercises the tiled-path padding
    batch = 24

    key = jax.random.PRNGKey(0)
    ks = jax.random.split(key, 13)

    params = dict(
        w1=0.1 * jax.random.normal(ks[0], (hidden_features, in_features), jnp.float32),
        b1=0.1 * jax.random.normal(ks[1], (hidden_features,), jnp.float32),
        gamma1=1.0 + 0.1 * jax.random.normal(ks[2], (hidden_features,), jnp.float32),
        beta1=0.1 * jax.random.normal(ks[3], (hidden_features,), jnp.float32),
        mean1=0.1 * jax.random.normal(ks[4], (hidden_features,), jnp.float32),
        var1=0.5 + jnp.abs(jax.random.normal(ks[5], (hidden_features,), jnp.float32)),
        w2=0.1 * jax.random.normal(ks[6], (in_features, hidden_features), jnp.float32),
        b2=0.1 * jax.random.normal(ks[7], (in_features,), jnp.float32),
        gamma2=1.0 + 0.1 * jax.random.normal(ks[8], (in_features,), jnp.float32),
        beta2=0.1 * jax.random.normal(ks[9], (in_features,), jnp.float32),
        mean2=0.1 * jax.random.normal(ks[10], (in_features,), jnp.float32),
        var2=0.5 + jnp.abs(jax.random.normal(ks[11], (in_features,), jnp.float32)),
    )
    x = jax.random.normal(ks[12], (batch, in_features), jnp.float32)
    ref = ffn_reference(x, params)

    # 1) Default path: resident weights (h_tiles == 1), bf16 MXU compute.
    prepped_bf16 = prepare_ffn_params(params, compute_dtype=jnp.bfloat16, mode="auto")
    out = jax.block_until_ready(ffn_forward(x, prepped_bf16))
    assert out.shape == x.shape
    assert jnp.allclose(out, ref, atol=5e-2, rtol=5e-2), float(
        jnp.max(jnp.abs(out - ref)))

    # 2) Resident path, f32 compute, multiple M tiles (weights resident across grid).
    prepped_f32 = prepare_ffn_params(params, compute_dtype=jnp.float32, mode="resident")
    out2 = jax.block_until_ready(ffn_forward(x, prepped_f32, tm=8))
    assert jnp.allclose(out2, ref, atol=1e-2, rtol=1e-2), float(
        jnp.max(jnp.abs(out2 - ref)))

    # 3) Tiled fallback path (2x2 grid: M tiles parallel, hidden axis accumulated),
    #    also exercises the ragged-M row padding.
    prepped_tiled = prepare_ffn_params(params, compute_dtype=jnp.float32,
                                       mode="tiled", th=128)
    out3 = jax.block_until_ready(ffn_forward(x, prepped_tiled, tm=16))
    assert jnp.allclose(out3, ref, atol=1e-2, rtol=1e-2), float(
        jnp.max(jnp.abs(out3 - ref)))

    print("KERNEL_OK")
</pallas_src>

<mosaic_0001>
module attributes {stable_mosaic.version = 11 : i64} {
  func.func @_ffn_kernel_resident(%arg0: i32, %arg1: memref<24x64xf32, #tpu.memory_space<vmem>>, %arg2: memref<64x200xbf16, #tpu.memory_space<vmem>>, %arg3: memref<1x200xf32, #tpu.memory_space<vmem>>, %arg4: memref<200x64xbf16, #tpu.memory_space<vmem>>, %arg5: memref<1x64xf32, #tpu.memory_space<vmem>>, %arg6: memref<24x64xf32, #tpu.memory_space<vmem>>) attributes {dimension_semantics = [#tpu.dimension_semantics<parallel>], iteration_bounds = array<i64: 1>, scalar_prefetch = 0 : i64, scratch_operands = 0 : i64, tpu.core_type = #tpu.core_type<tc>, window_params = [{transform_indices = @transform_0, window_bounds = array<i64: 24, 64>}, {pipeline_mode = #tpu.pipeline_mode<synchronous>, transform_indices = @transform_1, window_bounds = array<i64: 64, 200>}, {pipeline_mode = #tpu.pipeline_mode<synchronous>, transform_indices = @transform_2, window_bounds = array<i64: 1, 200>}, {pipeline_mode = #tpu.pipeline_mode<synchronous>, transform_indices = @transform_3, window_bounds = array<i64: 200, 64>}, {pipeline_mode = #tpu.pipeline_mode<synchronous>, transform_indices = @transform_4, window_bounds = array<i64: 1, 64>}, {transform_indices = @transform_5, window_bounds = array<i64: 24, 64>}]} {
    %c0 = arith.constant 0 : index
    %c0_0 = arith.constant 0 : index
    %0 = vector.load %arg1[%c0, %c0_0] : memref<24x64xf32, #tpu.memory_space<vmem>>, vector<24x64xf32>
    %1 = arith.truncf %0 : vector<24x64xf32> to vector<24x64xbf16>
    %c0_1 = arith.constant 0 : index
    %c0_2 = arith.constant 0 : index
    %2 = vector.load %arg2[%c0_1, %c0_2] : memref<64x200xbf16, #tpu.memory_space<vmem>>, vector<64x200xbf16>
    %cst = arith.constant dense<0.000000e+00> : vector<24x200xf32>
    %3 = tpu.matmul %1, %2, %cst {dimension_numbers = #tpu.dot_dimension_numbers<[1], [0], [0], [1], [0, 0, 1, 1], [], []>} : vector<24x64xbf16>, vector<64x200xbf16>, vector<24x200xf32> -> vector<24x200xf32>
    %c0_3 = arith.constant 0 : index
    %c0_4 = arith.constant 0 : index
    %4 = vector.load %arg3[%c0_3, %c0_4] : memref<1x200xf32, #tpu.memory_space<vmem>>, vector<1x200xf32>
    %5 = vector.broadcast %4 : vector<1x200xf32> to vector<24x200xf32>
    %6 = arith.addf %3, %5 : vector<24x200xf32>
    %cst_5 = arith.constant 0.000000e+00 : f32
    %7 = vector.broadcast %cst_5 : f32 to vector<24x200xf32>
    %8 = arith.maximumf %6, %7 : vector<24x200xf32>
    %9 = arith.truncf %8 : vector<24x200xf32> to vector<24x200xbf16>
    %c0_6 = arith.constant 0 : index
    %c0_7 = arith.constant 0 : index
    %10 = vector.load %arg4[%c0_6, %c0_7] : memref<200x64xbf16, #tpu.memory_space<vmem>>, vector<200x64xbf16>
    %cst_8 = arith.constant dense<0.000000e+00> : vector<24x64xf32>
    %11 = tpu.matmul %9, %10, %cst_8 {dimension_numbers = #tpu.dot_dimension_numbers<[1], [0], [0], [1], [0, 0, 1, 1], [], []>} : vector<24x200xbf16>, vector<200x64xbf16>, vector<24x64xf32> -> vector<24x64xf32>
    %c0_9 = arith.constant 0 : index
    %c0_10 = arith.constant 0 : index
    %12 = vector.load %arg5[%c0_9, %c0_10] : memref<1x64xf32, #tpu.memory_space<vmem>>, vector<1x64xf32>
    %13 = vector.broadcast %12 : vector<1x64xf32> to vector<24x64xf32>
    %14 = arith.addf %11, %13 : vector<24x64xf32>
    %15 = arith.addf %14, %0 : vector<24x64xf32>
    %c0_11 = arith.constant 0 : index
    %c0_12 = arith.constant 0 : index
    %16 = vector.load %arg6[%c0_11, %c0_12] : memref<24x64xf32, #tpu.memory_space<vmem>>, vector<24x64xf32>
    tpu.vector_store %arg6[%c0_11, %c0_12], %15 {strides = array<i32>} : memref<24x64xf32, #tpu.memory_space<vmem>>, vector<24x64xf32>,
    return
  }
  func.func @transform_0(%arg0: i32) -> (i32, i32) {
    %c0_i32 = arith.constant 0 : i32
    %c0_i32_0 = arith.constant 0 : i32
    return %arg0, %c0_i32 : i32, i32
  }
  func.func @transform_1(%arg0: i32) -> (i32, i32) {
    %c0_i32 = arith.constant 0 : i32
    %c0_i32_0 = arith.constant 0 : i32
    %c0_i32_1 = arith.constant 0 : i32
    return %c0_i32, %c0_i32_0 : i32, i32
  }
  func.func @transform_2(%arg0: i32) -> (i32, i32) {
    %c0_i32 = arith.constant 0 : i32
    %c0_i32_0 = arith.constant 0 : i32
    %c0_i32_1 = arith.constant 0 : i32
    return %c0_i32, %c0_i32_0 : i32, i32
  }
  func.func @transform_3(%arg0: i32) -> (i32, i32) {
    %c0_i32 = arith.constant 0 : i32
    %c0_i32_0 = arith.constant 0 : i32
    %c0_i32_1 = arith.constant 0 : i32
    return %c0_i32, %c0_i32_0 : i32, i32
  }
  func.func @transform_4(%arg0: i32) -> (i32, i32) {
    %c0_i32 = arith.constant 0 : i32
    %c0_i32_0 = arith.constant 0 : i32
    %c0_i32_1 = arith.constant 0 : i32
    return %c0_i32, %c0_i32_0 : i32, i32
  }
  func.func @transform_5(%arg0: i32) -> (i32, i32) {
    %c0_i32 = arith.constant 0 : i32
    %c0_i32_0 = arith.constant 0 : i32
    return %arg0, %c0_i32 : i32, i32
  }
}

</mosaic_0001>

<bundles_post_ra>
// kernel: tpu_custom_call.1
= control target key start
LH: loop header
LB: loop body
LE: loop exit
PB: predicated region body
PF: predicated region fallthrough
CT: control target
= control target key end

     0   :  { %s603_s0 = inlined_call_operand.vmem [shape: f32[24,64], index: 0, kind: input, shape index: {}]   ;;  %s604_s1 = inlined_call_operand.vmem [shape: bf16[64,200], index: 1, kind: input, shape index: {}]   ;;  %s605_s2 = inlined_call_operand.vmem [shape: f32[1,200], index: 2, kind: input, shape index: {}]   ;;  %s606_s3 = inlined_call_operand.vmem [shape: bf16[200,64], index: 3, kind: input, shape index: {}]   ;;  %s607_s4 = inlined_call_operand.vmem [shape: f32[1,64], index: 4, kind: input, shape index: {}]   ;;  %s608_s5 = inlined_call_operand.hbm [shape: f32[24,64], index: 5, kind: output, shape index: {}]  }
   0x1   :  { %v335_v0 = vld [vmem:[%s604_s1 + $0x30] sm:$0xf]  ;;  %v402_v1 = vld [vmem:[%s604_s1 + $0x34] sm:$0xf0]  ;;  %v401_v2 = vld [vmem:[%s604_s1 + $0x34] sm:$0xf] }
   0x2   :  { %v336_v3 = vor.u32 %v402_v1, %v335_v0  ;;  %v337_v4 = vld [vmem:[%s604_s1 + $0x38] sm:$0xf0]  ;;  %v327_v5 = vld [vmem:[%s604_s1 + $0x20] sm:$0xf]  ;;  %v400_v6 = vld [vmem:[%s604_s1 + $0x24] sm:$0xf0] }
   0x3   :  { %v340_v7 = vor.u32 %v401_v2, %v337_v4  ;;  %v399_v8 = vld [vmem:[%s604_s1 + $0x24] sm:$0xf]  ;;  %v329_v9 = vld [vmem:[%s604_s1 + $0x28] sm:$0xf0]  ;;  %v328_v10 = vor.u32 %v400_v6, %v327_v5  ;;  %v319_v12 = vld [vmem:[%s604_s1 + $0x10] sm:$0xf] }
   0x4   :  { %92 = vmatpush.bf16.msra.mxu0 %v336_v3  ;;  %v332_v11 = vor.u32 %v399_v8, %v329_v9  ;;  %v398_v13 = vld [vmem:[%s604_s1 + $0x14] sm:$0xf0]  ;;  %v397_v14 = vld [vmem:[%s604_s1 + $0x14] sm:$0xf]  ;;  %v321_v15 = vld [vmem:[%s604_s1 + $0x18] sm:$0xf0] }
   0x5   :  { %110 = vmatpush.bf16.msra.mxu1 %v340_v7  ;;  %v410_v16 = vld [vmem:[%s606_s3 + $0x38] sm:$0xff]  ;;  %v320_v17 = vor.u32 %v398_v13, %v319_v12  ;;  %v311_v18 = vld [vmem:[%s604_s1] sm:$0xf]  ;;  %v396_v19 = vld [vmem:[%s604_s1 + $0x4] sm:$0xf0]  ;;  %v324_v21 = vor.u32 %v397_v14, %v321_v15 }
   0x6   :  { %v158_v20 = vld [vmem:[%s606_s3 + $0x60] sm:$0xf]  ;;  %249 = vmatpush.bf16.msra.mxu2 %v410_v16  ;;  %v409_v22 = vld [vmem:[%s606_s3 + $0x30] sm:$0xff] }
   0x7   :  { %v212_v23 = vunpack.c.l.b16 %v158_v20 }
   0x8   :  { %93 = vmatpush.bf16.msra.mxu0 %v328_v10 }
   0x9   :  { %111 = vmatpush.bf16.msra.mxu1 %v332_v11 }
   0xa   :  { %10 = vsyncpa [#allocation3], 0  ;;  %v395_v24 = vld [vmem:[%s604_s1 + $0x4] sm:$0xf]  ;;  %v313_v25 = vld [vmem:[%s604_s1 + $0x8] sm:$0xf0]  ;;  %v225_v26 = vpack.c.b16 %v212_v23, %v212_v23  ;;  %v312_v27 = vor.u32 %v396_v19, %v311_v18  ;;  %250 = vmatpush.bf16.msra.mxu2 %v409_v22 }
   0xb   :  { %vm245_vm0 = vcmask 1043456   ;;  %v538_v28 = vld [vmem:[%s603_s0] sm:$0xff]  ;;  %v543_v29 = vld [vmem:[%s603_s0 + $0x8] sm:$0xff]  ;;  %v316_v30 = vor.u32 %v395_v24, %v313_v25  ;;  %vm81_vm1 = vcmask 523264   ;;  %v558_v35 = vld [vmem:[%s603_s0 + $0x10] sm:$0xff]  ;;  %vm238_vm2 = vcmask 588800  }
   0xc   :  { %94 = vmatpush.bf16.msra.mxu0 %v320_v17  ;;  %v408_v31 = vld [vmem:[%s606_s3 + $0x28] sm:$0xff]  ;;  %v247_v32 = vsel %vm245_vm0, %v225_v26, 0  ;;  %v25_v33 = vpack.c.bf16 %v543_v29, %v538_v28  ;;  %v407_v34 = vld [vmem:[%s606_s3 + $0x20] sm:$0xff]  ;;  %v26_v36 = vpack.c.bf16 %v558_v35, %v558_v35  ;;  %v406_v37 = vld [vmem:[%s606_s3 + $0x18] sm:$0xff]  ;;  %s297_s10 = sshll.u32 %s608_s5, 4  ;;  %s446_s11 = smov 128   ;;  %s298_s10 = int_to_ptr.hbm [resolvable:$true] %s297_s10 }
   0xd   :  { %112 = vmatpush.bf16.msra.mxu1 %v324_v21  ;;  %270 = vmatpush.bf16.msra.mxu3 %v247_v32  ;;  %v414_v38 = vld [vmem:[%s606_s3 + $0x58] sm:$0xff]  ;;  %v405_v39 = vld [vmem:[%s606_s3 + $0x10] sm:$0xff]  ;;  %v404_v41 = vld [vmem:[%s606_s3 + $0x8] sm:$0xff]  ;;  %s447_s1 = smov 8  }
   0xe   :  { %251 = vmatpush.bf16.msra.mxu2 %v408_v31  ;;  %v413_v40 = vld [vmem:[%s606_s3 + $0x50] sm:$0xff]  ;;  %v412_v42 = vld [vmem:[%s606_s3 + $0x48] sm:$0xff]  ;;  %v403_v43 = vld [vmem:[%s606_s3] sm:$0xff] }
   0xf   :  { %v411_v44 = vld [vmem:[%s606_s3 + $0x40] sm:$0xff] }
  0x10   :  { %95 = vmatpush.bf16.msra.mxu0 %v312_v27  ;;  %v35_v45 = vld [vmem:[%s605_s2] sm:$0x3] }
  0x11   :  { %113 = vmatpush.bf16.msra.mxu1 %v316_v30  ;;  %271 = vmatpush.bf16.msra.mxu3 %v414_v38  ;;  %v37_v48 = vperm.slane %v35_v45, 0  ;;  %v38_v49 = vperm.slane %v35_v45, 1  ;;  %v418_v8 = vld [vmem:[%s607_s4] ss:$0 sm:$0xff]  ;;  %s445_s4 = smov [#allocation2]  }
  0x12   :  { %252 = vmatpush.bf16.msra.mxu2 %v407_v34  ;;  %s295_s7 = sshll.u32 %s445_s4, 4  ;;  %s296_s7 = int_to_ptr.vmem [resolvable:$true] %s295_s7 }
  0x13   :  { %341 = vmatmul.msk.bf16.vlgmr.msra.gmra.mxu0 %vm81_vm1, %v25_v33 }
  0x14   :  { %343 = vmatmul.msk.bf16.vlgmr.msra.gmra.mxu1 %vm81_vm1, %v25_v33 }
  0x15   :  { %272 = vmatpush.bf16.msra.mxu3 %v413_v40 }
  0x16   :  { %253 = vmatpush.bf16.msra.mxu2 %v406_v37 }
  0x19   :  { %273 = vmatpush.bf16.msra.mxu3 %v412_v42 }
  0x1a   :  { %254 = vmatpush.bf16.msra.mxu2 %v405_v39 }
  0x1d   :  { %274 = vmatpush.bf16.msra.mxu3 %v411_v44 }
  0x1e   :  { %255 = vmatpush.bf16.msra.mxu2 %v404_v41 }
  0x22   :  { %256 = vmatpush.bf16.msra.mxu2 %v403_v43 }
  0x23   :  { %342 = vmatmul.msk.bf16.gmra.mxu0 %vm81_vm1, %v26_v36 }
  0x24   :  { %344 = vmatmul.msk.bf16.gmra.mxu1 %vm81_vm1, %v26_v36 }
  0x90   :  { %v97_v46 = vpop.f32.mrf.mxu0 }
  0x91   :  { %v115_v47 = vpop.f32.mrf.mxu1  ;;  %v98_v50 = vadd.f32 %v97_v46, %v37_v48 }
  0x92   :  { %v116_v51 = vadd.f32 %v115_v47, %v38_v49 }
  0x93   :  { %v124_v56 = vmax.f32 %v98_v50, 0.0 }
  0x94   :  { %v125_v58 = vmax.f32 %v116_v51, 0.0 }
  0x98   :  { %v99_v52 = vpop.f32.mrf.mxu0 }
  0x99   :  { %v100_v53 = vadd.f32 %v99_v52, %v37_v48  ;;  %v117_v54 = vpop.f32.mrf.mxu1 }
  0x9a   :  { %v118_v55 = vadd.f32 %v117_v54, %v38_v49 }
  0x9b   :  { %v126_v57 = vmax.f32 %v100_v53, 0.0 }
  0x9c   :  { %v127_v59 = vmax.f32 %v118_v55, 0.0 }
  0x9d   :  { %v130_v60 = vpack.c.bf16 %v126_v57, %v124_v56 }
  0x9e   :  { %v131_v61 = vpack.c.bf16 %v127_v59, %v125_v58 }
  0x9f   :  { %257 = vmatmul.bf16.vlgmr.msra.gmra.mxu2 %v130_v60 }
  0xa0   :  { %393 = vmatmul.msk.bf16.vlgmr.msra.gmra.mxu3 %vm238_vm2, %v131_v61  ;;  %v102_v62 = vpop.f32.mrf.mxu0 }
  0xa1   :  { %v120_v63 = vpop.f32.mrf.mxu1  ;;  %v103_v0 = vadd.f32 %v102_v62, %v37_v48 }
  0xa2   :  { %v121_v1 = vadd.f32 %v120_v63, %v38_v49 }
  0xa3   :  { %v128_v2 = vmax.f32 %v103_v0, 0.0 }
  0xa4   :  { %v129_v3 = vmax.f32 %v121_v1, 0.0 }
  0xa5   :  { %v132_v6 = vpack.c.bf16 %v128_v2, %v128_v2 }
  0xa6   :  { %v133_v7 = vpack.c.bf16 %v129_v3, %v129_v3 }
  0xa8   :  { %v104_v4 = vpop.f32.mrf.mxu0 }
  0xa9   :  { %v122_v5 = vpop.f32.mrf.mxu1 }
  0xaf   :  { %262 = vmatmul.bf16.gmra.mxu2 %v132_v6 }
  0xb0   :  { %394 = vmatmul.msk.bf16.gmra.mxu3 %vm238_vm2, %v133_v7 }
 0x122   :  { %v258_v9 = vpop.f32.mrf.mxu2 }
 0x123   :  { %v259_v10 = vadd.f32 %v418_v8, %v258_v9  ;;  %v276_v11 = vpop.f32.mrf.mxu3 }
 0x125   :  { %v277_v12 = vadd.f32 %v276_v11, %v259_v10 }
 0x127   :  { %v285_v13 = vadd.f32 %v277_v12, %v538_v28 }
 0x129   :  { %288 = vst.msk [vmem:[#allocation2] sm:$0xff] %vm81_vm1, %v285_v13 }
 0x12a   :  { %v260_v14 = vpop.f32.mrf.mxu2 }
 0x12b   :  { %v261_v15 = vadd.f32 %v418_v8, %v260_v14  ;;  %v278_v16 = vpop.f32.mrf.mxu3 }
 0x12d   :  { %v279_v17 = vadd.f32 %v278_v16, %v261_v15 }
 0x12f   :  { %v286_v18 = vadd.f32 %v279_v17, %v543_v29 }
 0x131   :  { %289 = vst.msk [vmem:[#allocation2 + $0x8] sm:$0xff] %vm81_vm1, %v286_v18 }
 0x132   :  { %v263_v19 = vpop.f32.mrf.mxu2 }
 0x133   :  { %v264_v20 = vadd.f32 %v418_v8, %v263_v19  ;;  %v281_v21 = vpop.f32.mrf.mxu3 }
 0x135   :  { %v282_v22 = vadd.f32 %v281_v21, %v264_v20 }
 0x137   :  { %v287_v23 = vadd.f32 %v282_v22, %v558_v35 }
 0x139   :  { %290 = vst.msk [vmem:[#allocation2 + $0x10] sm:$0xff] %vm81_vm1, %v287_v23 }
 0x13a   :  { %v265_v24 = vpop.f32.mrf.mxu2  ;;  %303 = dma.vmem_to_hbm [thread:$0]  %s296_s7, 384, %s298_s10, [#allocation3], %s446_s11, %s446_s11, %s447_s1  }
 0x13b   :  { %v283_v25 = vpop.f32.mrf.mxu3 }
 0x13c   :  { %443 = dma.done.wait [#allocation3], 384  }
 0x13d   :  { %444 = vsyncadd [#allocation3], 4294966912 }
 0x13e   :  { %308 = vsyncpa [#allocation3], 1 }

</bundles_post_ra>
